<compile_context>
chip_gen: v5e
topology: v5e:2x2
jax: 0.10.0
libtpu: 0.0.40
codegen_flags: <defaults>
</compile_context>

<pallas_src>
import functools

import jax
import jax.numpy as jnp
from jax.experimental import pallas as pl
from jax.experimental.pallas import tpu as pltpu

LANES = 128
SUBLANES = 8
MAX_TILE_ROWS = 2048   # 2048x128 f32 block = 1 MiB; 2 inputs, double-buffered ~4 MiB


def _round_up(x, m):
    return (x + m - 1) // m * m


def _focal_loss_kernel(x_ref, t_ref, o_ref, acc_ref, *,
                       alpha, gamma, n_valid, tile_rows, steps_per_split,
                       needs_mask, first_masked_block):
    p = pl.program_id(0)   # TensorCore split (parallel)
    i = pl.program_id(1)   # accumulation steps within the split (arbitrary)

    @pl.when(i == 0)
    def _init():
        acc_ref[...] = jnp.zeros_like(acc_ref)

    x = x_ref[...].astype(jnp.float32)
    t = t_ref[...].astype(jnp.float32)

    # Single target decode reused for the signed logit and the alpha select.
    is_pos = t > 0.5
    z = jnp.where(is_pos, x, -x)                   # signed logit
    nz = -z
    e = jnp.exp(jnp.minimum(z, nz))                # exp(-|z|): the only exp/element
    bce = jnp.maximum(nz, 0.0) + jnp.log1p(e)      # == BCE-with-logits (stable)

    # 1 - pt = 1 - exp(-bce) = sigmoid(-z).  Approximate reciprocal runs on the
    # otherwise-idle EUP slot; one Newton step restores f32-level accuracy.
    denom = 1.0 + e
    recip = pl.reciprocal(denom, approx=True)
    recip = recip * (2.0 - denom * recip)
    one_minus_pt = jnp.where(z >= 0.0, e, 1.0) * recip

    at = jnp.where(is_pos, 1.0 - alpha, alpha)     # alpha_table gather for {0,1}

    g = float(gamma)
    if g == 0.0:
        f_loss = at * bce
    elif g.is_integer() and 0.0 < g <= 8.0:
        mod = one_minus_pt
        for _ in range(int(g) - 1):
            mod = mod * one_minus_pt
        f_loss = at * mod * bce
    else:
        f_loss = at * jnp.power(one_minus_pt, g) * bce

    def accumulate(v):
        # Fold the (tile_rows, 128) tile onto the (8, 128) accumulator.  The
        # reshape keeps the (8, 128) minor tile, so the axis-0 sum is pure
        # vreg-wise VPU adds and only one vreg is loaded/stored per step.
        acc_ref[...] += jnp.sum(v.reshape(tile_rows // SUBLANES, SUBLANES, LANES),
                                axis=0)

    if needs_mask:
        block_idx = p * steps_per_split + i

        def _masked():
            row = (block_idx * tile_rows
                   + jax.lax.broadcasted_iota(jnp.int32, f_loss.shape, 0))
            lane = jax.lax.broadcasted_iota(jnp.int32, f_loss.shape, 1)
            valid = row * LANES + lane < n_valid
            accumulate(jnp.where(valid, f_loss, 0.0))

        if first_masked_block == 0:
            _masked()                              # every block is a boundary block
        else:
            pl.when(block_idx >= first_masked_block)(_masked)
            pl.when(block_idx < first_masked_block)(lambda: accumulate(f_loss))
    else:
        accumulate(f_loss)

    @pl.when(i == pl.num_programs(1) - 1)
    def _finalize():
        # Lane-dense, unmasked 8x128 store of the un-normalized partial sums.
        o_ref[...] = acc_ref[...]


def weighted_focal_loss(inputs, targets, *, alpha=1.0, gamma=0.0):
    """Focal BCE-with-logits loss (mean).  inputs/targets: same shape, targets in {0,1}."""
    x = jnp.ravel(inputs)      # ravel/reshape of default-layout arrays is a bitcast
    t = jnp.ravel(targets)
    n = x.shape[0]
    assert t.shape[0] == n

    rows = max(pl.cdiv(n, LANES), SUBLANES)
    pad = rows * LANES - n
    if pad:
        # TODO(synk): this pad is one extra XLA pass over the input; it is only
        # taken when n % 128 != 0 (< 1 row of padding) or the input is tiny (< 1024).
        x = jnp.pad(x, (0, pad))
        t = jnp.pad(t, (0, pad))
    x2d = x.reshape(rows, LANES)
    t2d = t.reshape(rows, LANES)

    # Megacore: split row-blocks across both v7x TensorCores whenever there is
    # enough work; the extra size-2 parallel grid axis is harmless on v5e/v6e.
    num_splits = 2 if rows >= 2 * SUBLANES else 1
    tile_rows = min(MAX_TILE_ROWS,
                    _round_up(pl.cdiv(rows, num_splits), SUBLANES),
                    (rows // SUBLANES) * SUBLANES)
    total_blocks = pl.cdiv(rows, tile_rows)
    if total_blocks < num_splits:           # safety net; not expected to trigger
        num_splits = 1
    steps_per_split = pl.cdiv(total_blocks, num_splits)

    tile_elems = tile_rows * LANES
    covered = num_splits * steps_per_split * tile_elems
    needs_mask = covered > n
    first_masked_block = n // tile_elems
    last_block = total_blocks - 1

    def in_map(p, i):
        # Clamp so an odd block count split over two cores re-reads the edge
        # block instead of indexing past the array (the mask zeroes it anyway).
        return (jnp.minimum(p * steps_per_split + i, last_block), 0)

    kernel = functools.partial(
        _focal_loss_kernel,
        alpha=float(alpha),
        gamma=float(gamma),
        n_valid=n,
        tile_rows=tile_rows,
        steps_per_split=steps_per_split,
        needs_mask=needs_mask,
        first_masked_block=first_masked_block,
    )

    out = pl.pallas_call(
        kernel,
        out_shape=jax.ShapeDtypeStruct((num_splits * SUBLANES, LANES), jnp.float32),
        grid_spec=pltpu.PrefetchScalarGridSpec(
            num_scalar_prefetch=0,
            grid=(num_splits, steps_per_split),
            in_specs=[
                pl.BlockSpec((tile_rows, LANES), in_map),
                pl.BlockSpec((tile_rows, LANES), in_map),
            ],
            out_specs=pl.BlockSpec((SUBLANES, LANES), lambda p, i: (p, 0)),
            scratch_shapes=[pltpu.VMEM((SUBLANES, LANES), jnp.float32)],
        ),
        compiler_params=pltpu.CompilerParams(
            dimension_semantics=("parallel", "arbitrary"),
        ),
    )(x2d, t2d)

    # Final cross-lane reduction over <= 2*8*128 f32 partials + mean, outside.
    return jnp.sum(out) / n


def _reference(inputs, targets, *, alpha, gamma):
    x = jnp.ravel(inputs).astype(jnp.float32)
    t = jnp.ravel(targets).astype(jnp.float32)
    bce = jnp.maximum(x, 0.0) - x * t + jnp.log1p(jnp.exp(-jnp.abs(x)))
    at = jnp.where(t > 0.5, 1.0 - alpha, alpha)
    pt = jnp.exp(-bce)
    return jnp.mean(at * (1.0 - pt) ** gamma * bce)


if __name__ == "__main__":
    key = jax.random.PRNGKey(0)
    k1, k2, k3, k4 = jax.random.split(key, 4)

    # Case 1: typical focal params (alpha=0.25, gamma=2) on an NCHW-shaped tensor.
    alpha, gamma = 0.25, 2.0
    shape = (2, 4, 16, 16)   # 2048 elements -> no pad, two megacore splits
    inputs = jax.random.normal(k1, shape, dtype=jnp.float32) * 2.0
    targets = jax.random.bernoulli(k2, 0.3, shape).astype(jnp.float32)

    loss = weighted_focal_loss(inputs, targets, alpha=alpha, gamma=gamma)
    jax.block_until_ready(loss)
    ref = _reference(inputs, targets, alpha=alpha, gamma=gamma)
    assert jnp.allclose(loss, ref, rtol=1e-4, atol=1e-6), (loss, ref)

    # Case 2: module defaults (alpha=1, gamma=0) with a ragged length -> exercises
    # the <1-row pad plus the boundary-block mask path.
    M = 2085
    inputs2 = jax.random.normal(k3, (M,), dtype=jnp.float32)
    targets2 = jax.random.bernoulli(k4, 0.5, (M,)).astype(jnp.float32)

    loss2 = weighted_focal_loss(inputs2, targets2, alpha=1.0, gamma=0.0)
    jax.block_until_ready(loss2)
    ref2 = _reference(inputs2, targets2, alpha=1.0, gamma=0.0)
    assert jnp.allclose(loss2, ref2, rtol=1e-4, atol=1e-6), (loss2, ref2)

    print("KERNEL_OK")
</pallas_src>

<mosaic_0001>
module attributes {stable_mosaic.version = 11 : i64} {
  func.func @_focal_loss_kernel(%arg0: i32, %arg1: i32, %arg2: memref<8x128xf32, #tpu.memory_space<vmem>>, %arg3: memref<8x128xf32, #tpu.memory_space<vmem>>, %arg4: memref<8x128xf32, #tpu.memory_space<vmem>>, %arg5: memref<8x128xf32, #tpu.memory_space<vmem>>) attributes {dimension_semantics = [#tpu.dimension_semantics<parallel>, #tpu.dimension_semantics<arbitrary>], iteration_bounds = array<i64: 2, 1>, scalar_prefetch = 0 : i64, scratch_operands = 1 : i64, tpu.core_type = #tpu.core_type<tc>, window_params = [{transform_indices = @transform_0, window_bounds = array<i64: 8, 128>}, {transform_indices = @transform_1, window_bounds = array<i64: 8, 128>}, {transform_indices = @transform_2, window_bounds = array<i64: 8, 128>}]} {
    %c0_i32 = arith.constant 0 : i32
    %0 = arith.cmpi eq, %arg1, %c0_i32 : i32
    %1 = arith.extui %0 : i1 to i32
    %c0_i32_0 = arith.constant 0 : i32
    %2 = arith.cmpi ne, %1, %c0_i32_0 : i32
    scf.if %2 {
      %cst_20 = arith.constant 0.000000e+00 : f32
      %44 = vector.broadcast %cst_20 : f32 to vector<8x128xf32>
      %c0_21 = arith.constant 0 : index
      %c0_22 = arith.constant 0 : index
      %45 = vector.load %arg5[%c0_21, %c0_22] : memref<8x128xf32, #tpu.memory_space<vmem>>, vector<8x128xf32>
      tpu.vector_store %arg5[%c0_21, %c0_22], %44 {strides = array<i32>} : memref<8x128xf32, #tpu.memory_space<vmem>>, vector<8x128xf32>,
    } else {
    }
    %c0 = arith.constant 0 : index
    %c0_1 = arith.constant 0 : index
    %3 = vector.load %arg2[%c0, %c0_1] : memref<8x128xf32, #tpu.memory_space<vmem>>, vector<8x128xf32>
    %c0_2 = arith.constant 0 : index
    %c0_3 = arith.constant 0 : index
    %4 = vector.load %arg3[%c0_2, %c0_3] : memref<8x128xf32, #tpu.memory_space<vmem>>, vector<8x128xf32>
    %cst = arith.constant 5.000000e-01 : f32
    %5 = vector.broadcast %cst : f32 to vector<8x128xf32>
    %6 = arith.cmpf ogt, %4, %5 : vector<8x128xf32>
    %cst_4 = arith.constant 0.000000e+00 : f32
    %7 = vector.broadcast %cst_4 : f32 to vector<8x128xf32>
    %8 = arith.subf %7, %3 : vector<8x128xf32>
    %9 = arith.select %6, %3, %8 : vector<8x128xi1>, vector<8x128xf32>
    %cst_5 = arith.constant 0.000000e+00 : f32
    %10 = vector.broadcast %cst_5 : f32 to vector<8x128xf32>
    %11 = arith.subf %10, %9 : vector<8x128xf32>
    %12 = arith.minimumf %9, %11 : vector<8x128xf32>
    %13 = math.exp %12 : vector<8x128xf32>
    %cst_6 = arith.constant 0.000000e+00 : f32
    %14 = vector.broadcast %cst_6 : f32 to vector<8x128xf32>
    %15 = arith.maximumf %11, %14 : vector<8x128xf32>
    %16 = math.log1p %13 : vector<8x128xf32>
    %17 = arith.addf %15, %16 : vector<8x128xf32>
    %cst_7 = arith.constant 1.000000e+00 : f32
    %18 = vector.broadcast %cst_7 : f32 to vector<8x128xf32>
    %19 = arith.addf %18, %13 : vector<8x128xf32>
    %20 = tpu.reciprocal %19 {approx = true} : vector<8x128xf32> -> vector<8x128xf32>
    %21 = arith.mulf %19, %20 : vector<8x128xf32>
    %cst_8 = arith.constant 2.000000e+00 : f32
    %22 = vector.broadcast %cst_8 : f32 to vector<8x128xf32>
    %23 = arith.subf %22, %21 : vector<8x128xf32>
    %24 = arith.mulf %20, %23 : vector<8x128xf32>
    %cst_9 = arith.constant 0.000000e+00 : f32
    %25 = vector.broadcast %cst_9 : f32 to vector<8x128xf32>
    %26 = arith.cmpf oge, %9, %25 : vector<8x128xf32>
    %cst_10 = arith.constant 1.000000e+00 : f32
    %27 = vector.broadcast %cst_10 : f32 to vector<8x128xf32>
    %28 = arith.select %26, %13, %27 : vector<8x128xi1>, vector<8x128xf32>
    %29 = arith.mulf %28, %24 : vector<8x128xf32>
    %cst_11 = arith.constant 7.500000e-01 : f32
    %cst_12 = arith.constant 2.500000e-01 : f32
    %30 = vector.broadcast %cst_11 : f32 to vector<8x128xf32>
    %31 = vector.broadcast %cst_12 : f32 to vector<8x128xf32>
    %32 = arith.select %6, %30, %31 : vector<8x128xi1>, vector<8x128xf32>
    %33 = arith.mulf %29, %29 : vector<8x128xf32>
    %34 = arith.mulf %32, %33 : vector<8x128xf32>
    %35 = arith.mulf %34, %17 : vector<8x128xf32>
    %c0_13 = arith.constant 0 : index
    %c0_14 = arith.constant 0 : index
    %36 = vector.load %arg5[%c0_13, %c0_14] : memref<8x128xf32, #tpu.memory_space<vmem>>, vector<8x128xf32>
    %37 = vector.shape_cast %35 : vector<8x128xf32> to vector<1x8x128xf32>
    %cst_15 = arith.constant dense<0.000000e+00> : vector<8x128xf32>
    %38 = vector.multi_reduction <add>, %37, %cst_15 [0] : vector<1x8x128xf32> to vector<8x128xf32>
    %39 = arith.addf %36, %38 : vector<8x128xf32>
    %c0_16 = arith.constant 0 : index
    %c0_17 = arith.constant 0 : index
    %40 = vector.load %arg5[%c0_16, %c0_17] : memref<8x128xf32, #tpu.memory_space<vmem>>, vector<8x128xf32>
    tpu.vector_store %arg5[%c0_16, %c0_17], %39 {strides = array<i32>} : memref<8x128xf32, #tpu.memory_space<vmem>>, vector<8x128xf32>,
    %c0_i32_18 = arith.constant 0 : i32
    %41 = arith.cmpi eq, %arg1, %c0_i32_18 : i32
    %42 = arith.extui %41 : i1 to i32
    %c0_i32_19 = arith.constant 0 : i32
    %43 = arith.cmpi ne, %42, %c0_i32_19 : i32
    scf.if %43 {
      %c0_20 = arith.constant 0 : index
      %c0_21 = arith.constant 0 : index
      %44 = vector.load %arg5[%c0_20, %c0_21] : memref<8x128xf32, #tpu.memory_space<vmem>>, vector<8x128xf32>
      %c0_22 = arith.constant 0 : index
      %c0_23 = arith.constant 0 : index
      %45 = vector.load %arg4[%c0_22, %c0_23] : memref<8x128xf32, #tpu.memory_space<vmem>>, vector<8x128xf32>
      tpu.vector_store %arg4[%c0_22, %c0_23], %44 {strides = array<i32>} : memref<8x128xf32, #tpu.memory_space<vmem>>, vector<8x128xf32>,
    } else {
    }
    return
  }
  func.func @transform_0(%arg0: i32, %arg1: i32) -> (i32, i32) {
    %c1_i32 = arith.constant 1 : i32
    %0 = arith.muli %arg0, %c1_i32 : i32
    %1 = arith.addi %0, %arg1 : i32
    %c1_i32_0 = arith.constant 1 : i32
    %2 = arith.minsi %1, %c1_i32_0 : i32
    %c0_i32 = arith.constant 0 : i32
    %c0_i32_1 = arith.constant 0 : i32
    return %2, %c0_i32 : i32, i32
  }
  func.func @transform_1(%arg0: i32, %arg1: i32) -> (i32, i32) {
    %c1_i32 = arith.constant 1 : i32
    %0 = arith.muli %arg0, %c1_i32 : i32
    %1 = arith.addi %0, %arg1 : i32
    %c1_i32_0 = arith.constant 1 : i32
    %2 = arith.minsi %1, %c1_i32_0 : i32
    %c0_i32 = arith.constant 0 : i32
    %c0_i32_1 = arith.constant 0 : i32
    return %2, %c0_i32 : i32, i32
  }
  func.func @transform_2(%arg0: i32, %arg1: i32) -> (i32, i32) {
    %c0_i32 = arith.constant 0 : i32
    %c0_i32_0 = arith.constant 0 : i32
    return %arg0, %c0_i32 : i32, i32
  }
}

</mosaic_0001>

<bundles_post_ra>
// kernel: tpu_custom_call.1
= control target key start
LH: loop header
LB: loop body
LE: loop exit
PB: predicated region body
PF: predicated region fallthrough
CT: control target
= control target key end

     0   :  { %s862_s0 = inlined_call_operand.hbm [shape: f32[16,128], index: 0, kind: input, shape index: {}]   ;;  %s863_s1 = inlined_call_operand.hbm [shape: f32[16,128], index: 1, kind: input, shape index: {}]   ;;  %s864_s2 = inlined_call_operand.hbm [shape: f32[16,128], index: 2, kind: output, shape index: {}]  }
   0x1   :  { %867 = sst [smem:[#allocation14_spill]] %s862_s0 }
   0x2   :  { %7 = vsyncpa [#allocation4], 0 }
   0x3   :  { %9 = vsyncpa [#allocation4 + $0x1], 0 }
   0x4   :  { %10 = vsyncpa [#allocation7], 0 }
   0x5   :  { %12 = vsyncpa [#allocation7 + $0x1], 0 }
   0x6   :  { %13 = vsyncpa [#allocation5], 0 }
   0x7   :  { %15 = vsyncpa [#allocation5 + $0x1], 0  ;;  %s701_s9 = smov 0   ;;  %s703_s10 = smov 0  }
   0x8   :  { %s705_s11 = smov 0   ;;  %s707_s12 = smov 0  }
   0x9   :  { %s709_s13 = smov 0   ;;  %s711_s14 = smov 0  }
   0xa   :  { %s713_s15 = smov 0   ;;  %s715_s16 = smov 0  }
   0xb   :  { %s717_s17 = smov 0  }
   0xc LB: > { %868 = sst [smem:[#allocation12_spill]] %s679_s16  ;;  %s399_s18 = sadd.s32 4294967295, %s683_s17   ;;  %s683_s17 = sphi %s717_s17, %s21_s17   ;;  %s679_s16 = sphi %s715_s16, %s876_s16   ;;  %s675_s15 = sphi %s713_s15, %s875_s15   ;;  %s671_s14 = sphi %s711_s14, %s882_s14   ;;  %s667_s13 = sphi %s709_s13, %s881_s13   ;;  %s663_s12 = sphi %s707_s12, %s880_s12   ;;  %s659_s11 = sphi %s705_s11, %s879_s11   ;;  %s655_s10 = sphi %s703_s10, %s878_s10   ;;  %s651_s9 = sphi %s701_s9, %s877_s9  }
   0xd   : > { %s400_s19 = sadd.s32 4294967294, %s683_s17   ;;  %s33_s20 = sadd.s32 1, %s679_s16 }
   0xe   : > { %p38_p0 = scmp.lt.s32.totalorder %s679_s16, 1  ;;  %p35_p1 = scmp.ge.s32.totalorder %s33_s20, 2 }
   0xf   : > { %s46_s21 = sadd.s32 1, %s671_s14  ;;  %p53_p2 = scmp.ne.s32.totalorder %s671_s14, %s667_s13 }
  0x10   : > { %s750_s22 = scalar_select %p38_p0, %s679_s16, 1 }
  0x11   : > { %s884_s20 = smov (%p35_p1, %s33_s20), 0  ;;  %p54_p3 = scmp.eq.s32.totalorder %s683_s17, 0 }
  0x12   : > { %869 = sst [smem:[#allocation13_spill]] %s884_s20  ;;  %p41_p4 = scmp.lt.s32.totalorder %s884_s20, 1 }
  0x13   : > { %p59_p5 = scmp.ne.s32.totalorder %s667_s13, %s663_s12  ;;  %p759_p6 = por %p54_p3, %p53_p2 }
  0x14   : > { %p60_p7 = scmp.eq.s32.totalorder %s399_s18, 0  ;;  %s101_s26 = ssub.s32 %s679_s16, %s884_s20 }
  0x15   : > { %s42_s24 = scalar_select %p41_p4, %s884_s20, 1 }
  0x16   : > { %p764_p8 = por %p60_p7, %p59_p5  ;;  %p102_p9 = scmp.eq.s32.totalorder %s101_s26, 0 }
  0x17   : > { %s43_s27 = ssub.s32 %s750_s22, %s42_s24  ;;  %s104_s28 = sadd.s32 1, %s659_s11 }
  0x18   : > { %p44_p10 = scmp.eq.s32.totalorder %s43_s27, 0  ;;  %p114_p11 = scmp.ne.s32.totalorder %s659_s11, %s655_s10 }
  0x19   : > { %s773_s29 = scalar_select %p102_p9, %s659_s11, %s104_s28  }
  0x1a   : > { %s776_s30 = scalar_select %p44_p10, %s671_s14, %s46_s21  }
  0x1b   : > { %p115_p12 = scmp.eq.s32.totalorder %s399_s18, 1  ;;  %p120_p13 = scmp.ne.s32.totalorder %s655_s10, %s651_s9 }
  0x1c   : > { %p121_p0 = scmp.eq.s32.totalorder %s400_s19, 1  ;;  %p402_p2 = scmp.ge.s32.totalorder %s683_s17, 2 }
  0x1d   : > { %p782_p1 = por %p115_p12, %p114_p11  ;;  %p432_p4 = scmp.lt.s32.totalorder %s683_s17, 2 }
  0x1e   : > { %p787_p3 = por %p121_p0, %p120_p13  ;;  %s141_s5 = sand.u32 1, %s671_s14  }
  0x1f   : > { %s404_s6 = sshll.u32 %s750_s22, 3  ;;  %s403_s7 = sshll.u32 %s141_s5, 3 }
  0x20   : > { %s874_s0 = sld [smem:[#allocation14_spill]]  ;;  %s145_s19 = scalar_lea.vmem [#allocation3], %s403_s7 }
  0x21   : > { %s156_s24 = sshll.u32 %s145_s19, 4  ;;  %p422_p5 = pnand %p432_p4, %p759_p6  ;;  %s157_s24 = int_to_ptr.vmem [resolvable:$true] %s156_s24 }
  0x22   : > { %p407_p7 = scmp.ge.s32.totalorder %s683_s17, 1  ;;  %p183_p9 = scmp.lt.s32.totalorder %s683_s17, 3 }
  0x23   : > { %s142_s26 = scalar_lea.sflag [#allocation4], %s141_s5  ;;  %s174_s22 = scalar_lea.hbm %s863_s1, %s404_s6 }
  0x24   : > { %p184_p10 = pnand %p407_p7, %p183_p9  ;;  %s176_s20 = sshll.u32 %s174_s22, 4  ;;  %s177_s20 = int_to_ptr.hbm [resolvable:$true] %s176_s20 }
  0x25   : > { %s167_s16 = scalar_lea.vmem [#allocation6], %s403_s7  ;;  %s164_s12 = scalar_lea.sflag [#allocation7], %s141_s5 }
  0x26   : > { %s152_s18 = scalar_lea.hbm %s874_s0, %s404_s6  ;;  %s178_s8 = sshll.u32 %s167_s16, 4  ;;  %s179_s8 = int_to_ptr.vmem [resolvable:$true] %s178_s8 }
  0x27   : > { %s154_s21 = sshll.u32 %s152_s18, 4  ;;  %187 = sbr.rel (%p184_p10) target bundleno = 92 (0x5c), region = 28  ;;  %s155_s21 = int_to_ptr.hbm [resolvable:$true] %s154_s21 }
  0x28   : > { %424 = dma.hbm_to_vmem [thread:$0]  (!%p422_p5), %s155_s21, 128, %s157_s24, %s142_s26  }
  0x29   : > { %427 = dma.hbm_to_vmem [thread:$0]  (!%p422_p5), %s177_s20, 128, %s179_s8, %s164_s12  }
  0x2a   : > { %s189_s23 = sand.u32 (!%p184_p10), 1, %s667_s13  }
  0x2b   : > { %s408_s18 = sshll.u32 (!%p184_p10), %s189_s23, 3  ;;  %s190_s19 = scalar_lea.sflag (!%p184_p10), [#allocation4], %s189_s23 }
  0x2c   : > { %s193_s0 = scalar_lea.vmem [#allocation3], %s408_s18 }
  0x2d   : > { %638 = dma.done.wait (%p764_p8), %s190_s19, 128  }
  0x2e   : > { %640 = vsyncadd (%p764_p8), %s190_s19, 4294967168  ;;  %s200_s6 = scalar_lea.sflag [#allocation7], %s189_s23  ;;  %s203_s7 = scalar_lea.vmem [#allocation6], %s408_s18 }
  0x2f   : > { %642 = dma.done.wait (%p764_p8), %s200_s6, 128  }
  0x30   : > { %644 = vsyncadd (%p764_p8), %s200_s6, 4294967168  ;;  %v241_v0 = vld [vmem:[%s193_s0] sm:$0xff]  ;;  %v242_v1 = vld [vmem:[%s203_s7] sm:$0xff]  ;;  %s227_s0 = sand.u32 1, %s655_s10   ;;  %s412_s20 = sshll.u32 %s675_s15, 3  ;;  %v685_v23 = vmov 0.25  }
  0x31   : > { %vm243_vm0 = vcmp.gt.f32.partialorder %v242_v1, 0.5  ;;  %v244_v2 = vsub.f32 0.0, %v241_v0  ;;  %s410_s16 = sshll.u32 %s227_s0, 3  ;;  %s293_s21 = scalar_lea.hbm %s864_s2, %s412_s20 }
  0x32   : > { %v269_v24 = vsel %vm243_vm0, 0.75, %v685_v23  ;;  %s229_s24 = scalar_lea.vmem [#allocation8], %s410_s16  ;;  %s297_s27 = sshll.u32 %s293_s21, 4  ;;  %s298_s27 = int_to_ptr.hbm [resolvable:$true] %s297_s27 }
  0x33   : > { %v245_v3 = vsel %vm243_vm0, %v241_v0, %v244_v2  ;;  %s295_s26 = sshll.u32 %s229_s24, 4  ;;  %s283_s15 = scalar_lea.sflag [#allocation5], %s227_s0  ;;  %s296_s26 = int_to_ptr.vmem [resolvable:$true] %s295_s26 }
  0x34   : > { %v246_v4 = vsub.f32 0.0, %v245_v3  ;;  %vm266_vm1 = vcmp.ge.f32.partialorder %v245_v3, 0.0  ;;  %s587_s28 = sshra.s32 %s298_s27, 4  ;;  %s593_s23 = scalar_lea.hbm %s864_s2, 16  ;;  %s588_s28 = int_to_ptr.hbm [resolvable:$true] %s587_s28 }
  0x35   : > { %s589_s22 = scalar_lea.hbm %s588_s28, 8  ;;  %p594_p12 = scmp.lt.s32.totalorder %s588_s28, %s864_s2 }
  0x36   : > { %v247_v5 = vmin.f32 %v245_v3, %v246_v4  ;;  %v250_v19 = vmax.f32 %v246_v4, 0.0  ;;  %p590_p6 = scmp.ne.s32.totalorder %s588_s28, %s589_s22  ;;  %p595_p13 = scmp.lt.s32.totalorder %s593_s23, %s589_s22 }
  0x38   : > { %v248_v6 = vmul.f32 1.442695, %v247_v5  ;;  %p591_p8 = pnand %p590_p6, %p782_p1  ;;  %p596_p0 = por %p595_p13, %p594_p12 }
  0x3a   : > { %507 = vpow2.f32 %v248_v6  ;;  %p592_p11 = pneg %p591_p8 }
  0x3c   : > { %p597_p4 = pnand %p596_p0, %p592_p11 }
  0x40   : > { %v508_v7 = vpop.eup %507 }
  0x41   : > { %v251_v8 = vadd.f32 1.0, %v508_v7  ;;  %v254_v9 = vmul.f32 -0.5, %v508_v7  ;;  %v257_v12 = vand.u32 2147483647, %v508_v7  ;;  %v267_v18 = vsel %vm266_vm1, %v508_v7, 1.0 }
  0x43   : > { %509 = vlog2.f32 %v251_v8  ;;  %v255_v10 = vadd.f32 1.0, %v254_v9  ;;  %vm258_vm2 = vcmp.lt.f32.partialorder %v257_v12, 0.0004427343 }
  0x44   : > { %511 = vrcp.f32 %v251_v8 }
  0x45   : > { %v256_v16 = vmul.f32 %v508_v7, %v255_v10 }
  0x49   : > { %v510_v11 = vpop.eup %509 }
  0x4a   : > { %v512_v13 = vpop.eup %511  ;;  %v253_v15 = vmul.f32 0.6931472, %v510_v11 }
  0x4b   : > { %v263_v14 = vmul.f32 %v512_v13, %v251_v8 }
  0x4c   : > { %v259_v21 = vsel %vm258_vm2, %v256_v16, %v253_v15 }
  0x4d   : > { %v264_v17 = vsub.f32 2.0, %v263_v14  ;;  %v260_v25 = vadd.f32 %v259_v21, %v250_v19 }
  0x4f   : > { %v265_v20 = vmul.f32 %v512_v13, %v264_v17 }
  0x51   : > { %v268_v22 = vmul.f32 %v267_v18, %v265_v20 }
  0x53   : > { %v270_v26 = vmul.f32 %v268_v22, %v268_v22 }
  0x55   : > { %v271_v27 = vmul.f32 %v270_v26, %v269_v24 }
  0x57   : > { %v272_v28 = vmul.f32 %v271_v27, %v260_v25 }
  0x59   : > { %281 = vst [vmem:[%s229_s24] sm:$0xff] %v272_v28 }
  0x5a   : > { %600 = shalt.err (!%p597_p4)
}
  0x5b   : > { %419 = dma.vmem_to_hbm [thread:$0]  (%p782_p1), %s296_s26, 128, %s298_s27, %s283_s15  }
  0x5c PF: > { %s309_s6 = sand.u32 1, %s651_s9   ;;  %p429_p5 = pnand %p402_p2, %p787_p3 }
  0x5d   : > { %s310_s7 = scalar_lea.sflag [#allocation5], %s309_s6 }
  0x5e   : > { %p430_p7 = pneg %p429_p5 }
  0x60   : > { %646 = dma.done.wait (%p430_p7), %s310_s7, 128  }
  0x61   : > { %648 = vsyncadd (%p430_p7), %s310_s7, 4294967168  ;;  %s21_s17 = sadd.s32 1, %s683_s17   ;;  %s875_s15 = sld [smem:[#allocation12_spill]] }
  0x62   : > { %p18_p9 = scmp.ge.s32.totalorder %s21_s17, 4   ;;  %s876_s16 = sld [smem:[#allocation13_spill]] }
  0x63   : > { %s877_s9 = smov %s655_s10  ;;  %s878_s10 = smov %s659_s11 }
  0x64   : > { %s879_s11 = smov %s773_s29  ;;  %s880_s12 = smov %s667_s13 }
  0x65   : > { %s881_s13 = smov %s671_s14  ;;  %s882_s14 = smov %s776_s30 }
  0x66   :  { %20 = sbr.rel (!%p18_p9) target bundleno = 12 (0xc), region = 94 }
  0x6b   :  { %316 = vsyncpa [#allocation4], 1 }
  0x6c   :  { %318 = vsyncpa [#allocation4 + $0x1], 1 }
  0x6d   :  { %319 = vsyncpa [#allocation7], 1 }
  0x6e   :  { %321 = vsyncpa [#allocation7 + $0x1], 1 }
  0x6f   :  { %322 = vsyncpa [#allocation5], 1 }
  0x70   :  { %324 = vsyncpa [#allocation5 + $0x1], 1 }

</bundles_post_ra>
